<compile_context>
chip_gen: v6e
topology: v6e:2x2x1
jax: 0.10.0
libtpu: 0.0.40
codegen_flags: <defaults>
</compile_context>

<pallas_src>
import jax
import jax.numpy as jnp
from jax.experimental import pallas as pl
from jax.experimental.pallas import tpu as pltpu

LANES = 128           # TPU lane width; pad every feature dim to this.
DEFAULT_BLOCK_M = 256  # batch tile (sublane dim); >=256 per perf guidance.


def _round_up(n, m):
    return ((n + m - 1) // m) * m


def qnetwork_kernel(x_ref, w1_ref, b1_ref, w2_ref, b2_ref, w3_ref, b3_ref, o_ref):
    # One (BLOCK_M, 128) batch tile per grid step; weights are VMEM-resident.
    x = x_ref[...]
    h1 = jnp.dot(x, w1_ref[...], preferred_element_type=jnp.float32) + b1_ref[...]
    h1 = jnp.maximum(h1, 0.0)
    h2 = jnp.dot(h1, w2_ref[...], preferred_element_type=jnp.float32) + b2_ref[...]
    h2 = jnp.maximum(h2, 0.0)
    out = jnp.dot(h2, w3_ref[...], preferred_element_type=jnp.float32) + b3_ref[...]
    o_ref[...] = out.astype(o_ref.dtype)  # lane-dense (BLOCK_M, 128) store


def qnetwork_forward(x, w1, b1, w2, b2, w3, b3, *, block_m=DEFAULT_BLOCK_M):
    """x: (batch, state). Weights stored pre-transposed as (in, out); biases (1, out)."""
    batch, state = x.shape
    hid1 = w1.shape[1]
    hid2 = w2.shape[1]
    n_act = w3.shape[1]

    # Lane-pad feature dims, sublane/tile-pad batch.
    sp = _round_up(state, LANES)
    h1p = _round_up(hid1, LANES)
    h2p = _round_up(hid2, LANES)
    ap = _round_up(n_act, LANES)
    bp = _round_up(max(batch, 1), block_m)

    f32 = jnp.float32
    xp = jnp.zeros((bp, sp), f32).at[:batch, :state].set(x.astype(f32))
    w1p = jnp.zeros((sp, h1p), f32).at[:state, :hid1].set(w1)
    b1p = jnp.zeros((1, h1p), f32).at[:, :hid1].set(b1)
    w2p = jnp.zeros((h1p, h2p), f32).at[:hid1, :hid2].set(w2)
    b2p = jnp.zeros((1, h2p), f32).at[:, :hid2].set(b2)
    w3p = jnp.zeros((h2p, ap), f32).at[:hid2, :n_act].set(w3)
    b3p = jnp.zeros((1, ap), f32).at[:, :n_act].set(b3)

    grid = (bp // block_m,)
    resident = lambda shape: pl.BlockSpec(shape, lambda i: (0, 0))  # stays in VMEM

    out_padded = pl.pallas_call(
        qnetwork_kernel,
        out_shape=jax.ShapeDtypeStruct((bp, ap), f32),
        grid=grid,
        in_specs=[
            pl.BlockSpec((block_m, sp), lambda i: (i, 0)),  # x tile streamed over batch
            resident((sp, h1p)), resident((1, h1p)),
            resident((h1p, h2p)), resident((1, h2p)),
            resident((h2p, ap)), resident((1, ap)),
        ],
        out_specs=pl.BlockSpec((block_m, ap), lambda i: (i, 0)),
        compiler_params=pltpu.CompilerParams(
            dimension_semantics=("parallel",),  # let v7x's 2 TCs split the batch grid
        ),
    )(xp, w1p, b1p, w2p, b2p, w3p, b3p)

    return out_padded[:batch, :n_act]


def init_linear_params(key, in_dim, out_dim):
    # Mimics nn.Linear's U(-1/sqrt(in), 1/sqrt(in)); stored as (in, out) == W.T.
    kw, kb = jax.random.split(key)
    bound = 1.0 / jnp.sqrt(jnp.float32(in_dim))
    w_t = jax.random.uniform(kw, (in_dim, out_dim), jnp.float32, -bound, bound)
    b = jax.random.uniform(kb, (1, out_dim), jnp.float32, -bound, bound)
    return w_t, b


def reference_forward(x, w1, b1, w2, b2, w3, b3):
    h1 = jnp.maximum(x @ w1 + b1, 0.0)
    h2 = jnp.maximum(h1 @ w2 + b2, 0.0)
    return h2 @ w3 + b3


if __name__ == "__main__":
    # params = {'state_size': 16, 'first_layer_size': 32,
    #           'second_layer_size': 32, 'number_of_actions': 4}
    state_size = 16
    first_layer_size = 32
    second_layer_size = 32
    number_of_actions = 4
    batch = 2

    key = jax.random.PRNGKey(0)
    kx, k1, k2, k3 = jax.random.split(key, 4)

    x = jax.random.normal(kx, (batch, state_size), jnp.float32)
    w1, b1 = init_linear_params(k1, state_size, first_layer_size)
    w2, b2 = init_linear_params(k2, first_layer_size, second_layer_size)
    w3, b3 = init_linear_params(k3, second_layer_size, number_of_actions)

    out = qnetwork_forward(x, w1, b1, w2, b2, w3, b3)
    out = jax.block_until_ready(out)

    ref = reference_forward(x, w1, b1, w2, b2, w3, b3)
    assert out.shape == (batch, number_of_actions)
    assert jnp.allclose(out, ref, atol=1e-5, rtol=1e-5)

    # Also exercise a multi-step grid (batch spanning >1 tile) for the pipelined path.
    big_batch = 2 * DEFAULT_BLOCK_M + 7
    xb = jax.random.normal(kx, (big_batch, state_size), jnp.float32)
    out_big = jax.block_until_ready(qnetwork_forward(xb, w1, b1, w2, b2, w3, b3))
    ref_big = reference_forward(xb, w1, b1, w2, b2, w3, b3)
    assert out_big.shape == (big_batch, number_of_actions)
    assert jnp.allclose(out_big, ref_big, atol=1e-5, rtol=1e-5)

    print("KERNEL_OK")
</pallas_src>

<mosaic_0001>
module attributes {stable_mosaic.version = 11 : i64} {
  func.func @qnetwork_kernel(%arg0: i32, %arg1: memref<256x128xf32, #tpu.memory_space<vmem>>, %arg2: memref<128x128xf32, #tpu.memory_space<vmem>>, %arg3: memref<1x128xf32, #tpu.memory_space<vmem>>, %arg4: memref<128x128xf32, #tpu.memory_space<vmem>>, %arg5: memref<1x128xf32, #tpu.memory_space<vmem>>, %arg6: memref<128x128xf32, #tpu.memory_space<vmem>>, %arg7: memref<1x128xf32, #tpu.memory_space<vmem>>, %arg8: memref<256x128xf32, #tpu.memory_space<vmem>>) attributes {dimension_semantics = [#tpu.dimension_semantics<parallel>], iteration_bounds = array<i64: 1>, scalar_prefetch = 0 : i64, scratch_operands = 0 : i64, tpu.core_type = #tpu.core_type<tc>, window_params = [{transform_indices = @transform_0, window_bounds = array<i64: 256, 128>}, {pipeline_mode = #tpu.pipeline_mode<synchronous>, transform_indices = @transform_1, window_bounds = array<i64: 128, 128>}, {pipeline_mode = #tpu.pipeline_mode<synchronous>, transform_indices = @transform_2, window_bounds = array<i64: 1, 128>}, {pipeline_mode = #tpu.pipeline_mode<synchronous>, transform_indices = @transform_3, window_bounds = array<i64: 128, 128>}, {pipeline_mode = #tpu.pipeline_mode<synchronous>, transform_indices = @transform_4, window_bounds = array<i64: 1, 128>}, {pipeline_mode = #tpu.pipeline_mode<synchronous>, transform_indices = @transform_5, window_bounds = array<i64: 128, 128>}, {pipeline_mode = #tpu.pipeline_mode<synchronous>, transform_indices = @transform_6, window_bounds = array<i64: 1, 128>}, {transform_indices = @transform_7, window_bounds = array<i64: 256, 128>}]} {
    %c0 = arith.constant 0 : index
    %c0_0 = arith.constant 0 : index
    %0 = vector.load %arg1[%c0, %c0_0] : memref<256x128xf32, #tpu.memory_space<vmem>>, vector<256x128xf32>
    %c0_1 = arith.constant 0 : index
    %c0_2 = arith.constant 0 : index
    %1 = vector.load %arg2[%c0_1, %c0_2] : memref<128x128xf32, #tpu.memory_space<vmem>>, vector<128x128xf32>
    %cst = arith.constant dense<0.000000e+00> : vector<256x128xf32>
    %2 = tpu.matmul %0, %1, %cst {dimension_numbers = #tpu.dot_dimension_numbers<[1], [0], [0], [1], [0, 0, 1, 1], [], []>} : vector<256x128xf32>, vector<128x128xf32>, vector<256x128xf32> -> vector<256x128xf32>
    %c0_3 = arith.constant 0 : index
    %c0_4 = arith.constant 0 : index
    %3 = vector.load %arg3[%c0_3, %c0_4] : memref<1x128xf32, #tpu.memory_space<vmem>>, vector<1x128xf32>
    %4 = vector.broadcast %3 : vector<1x128xf32> to vector<256x128xf32>
    %5 = arith.addf %2, %4 : vector<256x128xf32>
    %cst_5 = arith.constant 0.000000e+00 : f32
    %6 = vector.broadcast %cst_5 : f32 to vector<256x128xf32>
    %7 = arith.maximumf %5, %6 : vector<256x128xf32>
    %c0_6 = arith.constant 0 : index
    %c0_7 = arith.constant 0 : index
    %8 = vector.load %arg4[%c0_6, %c0_7] : memref<128x128xf32, #tpu.memory_space<vmem>>, vector<128x128xf32>
    %cst_8 = arith.constant dense<0.000000e+00> : vector<256x128xf32>
    %9 = tpu.matmul %7, %8, %cst_8 {dimension_numbers = #tpu.dot_dimension_numbers<[1], [0], [0], [1], [0, 0, 1, 1], [], []>} : vector<256x128xf32>, vector<128x128xf32>, vector<256x128xf32> -> vector<256x128xf32>
    %c0_9 = arith.constant 0 : index
    %c0_10 = arith.constant 0 : index
    %10 = vector.load %arg5[%c0_9, %c0_10] : memref<1x128xf32, #tpu.memory_space<vmem>>, vector<1x128xf32>
    %11 = vector.broadcast %10 : vector<1x128xf32> to vector<256x128xf32>
    %12 = arith.addf %9, %11 : vector<256x128xf32>
    %cst_11 = arith.constant 0.000000e+00 : f32
    %13 = vector.broadcast %cst_11 : f32 to vector<256x128xf32>
    %14 = arith.maximumf %12, %13 : vector<256x128xf32>
    %c0_12 = arith.constant 0 : index
    %c0_13 = arith.constant 0 : index
    %15 = vector.load %arg6[%c0_12, %c0_13] : memref<128x128xf32, #tpu.memory_space<vmem>>, vector<128x128xf32>
    %cst_14 = arith.constant dense<0.000000e+00> : vector<256x128xf32>
    %16 = tpu.matmul %14, %15, %cst_14 {dimension_numbers = #tpu.dot_dimension_numbers<[1], [0], [0], [1], [0, 0, 1, 1], [], []>} : vector<256x128xf32>, vector<128x128xf32>, vector<256x128xf32> -> vector<256x128xf32>
    %c0_15 = arith.constant 0 : index
    %c0_16 = arith.constant 0 : index
    %17 = vector.load %arg7[%c0_15, %c0_16] : memref<1x128xf32, #tpu.memory_space<vmem>>, vector<1x128xf32>
    %18 = vector.broadcast %17 : vector<1x128xf32> to vector<256x128xf32>
    %19 = arith.addf %16, %18 : vector<256x128xf32>
    %c0_17 = arith.constant 0 : index
    %c0_18 = arith.constant 0 : index
    %20 = vector.load %arg8[%c0_17, %c0_18] : memref<256x128xf32, #tpu.memory_space<vmem>>, vector<256x128xf32>
    tpu.vector_store %arg8[%c0_17, %c0_18], %19 {strides = array<i32>} : memref<256x128xf32, #tpu.memory_space<vmem>>, vector<256x128xf32>,
    return
  }
  func.func @transform_0(%arg0: i32) -> (i32, i32) {
    %c0_i32 = arith.constant 0 : i32
    %c0_i32_0 = arith.constant 0 : i32
    return %arg0, %c0_i32 : i32, i32
  }
  func.func @transform_1(%arg0: i32) -> (i32, i32) {
    %c0_i32 = arith.constant 0 : i32
    %c0_i32_0 = arith.constant 0 : i32
    %c0_i32_1 = arith.constant 0 : i32
    return %c0_i32, %c0_i32_0 : i32, i32
  }
  func.func @transform_2(%arg0: i32) -> (i32, i32) {
    %c0_i32 = arith.constant 0 : i32
    %c0_i32_0 = arith.constant 0 : i32
    %c0_i32_1 = arith.constant 0 : i32
    return %c0_i32, %c0_i32_0 : i32, i32
  }
  func.func @transform_3(%arg0: i32) -> (i32, i32) {
    %c0_i32 = arith.constant 0 : i32
    %c0_i32_0 = arith.constant 0 : i32
    %c0_i32_1 = arith.constant 0 : i32
    return %c0_i32, %c0_i32_0 : i32, i32
  }
  func.func @transform_4(%arg0: i32) -> (i32, i32) {
    %c0_i32 = arith.constant 0 : i32
    %c0_i32_0 = arith.constant 0 : i32
    %c0_i32_1 = arith.constant 0 : i32
    return %c0_i32, %c0_i32_0 : i32, i32
  }
  func.func @transform_5(%arg0: i32) -> (i32, i32) {
    %c0_i32 = arith.constant 0 : i32
    %c0_i32_0 = arith.constant 0 : i32
    %c0_i32_1 = arith.constant 0 : i32
    return %c0_i32, %c0_i32_0 : i32, i32
  }
  func.func @transform_6(%arg0: i32) -> (i32, i32) {
    %c0_i32 = arith.constant 0 : i32
    %c0_i32_0 = arith.constant 0 : i32
    %c0_i32_1 = arith.constant 0 : i32
    return %c0_i32, %c0_i32_0 : i32, i32
  }
  func.func @transform_7(%arg0: i32) -> (i32, i32) {
    %c0_i32 = arith.constant 0 : i32
    %c0_i32_0 = arith.constant 0 : i32
    return %arg0, %c0_i32 : i32, i32
  }
}

</mosaic_0001>

<bundles_post_ra>
// kernel: tpu_custom_call.1
= control target key start
LH: loop header
LB: loop body
LE: loop exit
PB: predicated region body
PF: predicated region fallthrough
CT: control target
= control target key end

     0   :  { %12 = vsyncpa [#allocation3], 0  ;;  %s1704_s0 = inlined_call_operand.hbm [shape: f32[256,128], index: 0, kind: input, shape index: {}]   ;;  %s1705_s1 = inlined_call_operand.hbm [shape: f32[128,128], index: 1, kind: input, shape index: {}]   ;;  %s1706_s2 = inlined_call_operand.vmem [shape: f32[1,128], index: 2, kind: input, shape index: {}]   ;;  %s1707_s3 = inlined_call_operand.hbm [shape: f32[128,128], index: 3, kind: input, shape index: {}]   ;;  %s1708_s4 = inlined_call_operand.vmem [shape: f32[1,128], index: 4, kind: input, shape index: {}]   ;;  %s1709_s5 = inlined_call_operand.hbm [shape: f32[128,128], index: 5, kind: input, shape index: {}]   ;;  %s1710_s6 = inlined_call_operand.vmem [shape: f32[1,128], index: 6, kind: input, shape index: {}]   ;;  %s1711_s7 = inlined_call_operand.hbm [shape: f32[256,128], index: 7, kind: output, shape index: {}]  }
   0x1   :  { %13 = vsyncpa [#allocation6], 0 }
   0x2   :  { %14 = vsyncpa [#allocation9], 0 }
   0x3   :  { %15 = vsyncpa [#allocation4], 0  ;;  %s1507_s24 = smov [#allocation5]   ;;  %s1508_s26 = smov [#allocation2]  }
   0x4   :  { %s33_s25 = sshll.u32 %s1507_s24, 4  ;;  %s21_s27 = sshll.u32 %s1508_s26, 4  ;;  %s34_s25 = int_to_ptr.vmem [resolvable:$true] %s33_s25  ;;  %s22_s27 = int_to_ptr.vmem [resolvable:$true] %s21_s27 }
   0x5   :  { %s1407_s28 = scalar_lea.vmem %s34_s25, 2048  ;;  %p1412_p1 = scmp.lt.s32.totalorder %s34_s25, %s34_s25 }
   0x6   :  { %p1408_p0 = scmp.ne.s32.totalorder %s34_s25, %s1407_s28  ;;  %p1413_p2 = scmp.lt.s32.totalorder %s1407_s28, %s1407_s28 }
   0x8   :  { %p1414_p3 = por %p1413_p2, %p1412_p1 }
   0xa   :  { %p1415_p4 = pnand %p1414_p3, %p1408_p0 }
   0xc   :  { %1418 = shalt.err (!%p1415_p4)
}
   0xd   :  { %s1509_s29 = smov 128   ;;  %s1510_s30 = smov 8  }
   0xe   :  { %39 = dma.hbm_to_vmem [thread:$0]  %s1705_s1, 2048, %s34_s25, [#allocation6], %s1509_s29, %s1509_s29, %s1510_s30  }
   0xf   :  { %s1427_s10 = scalar_lea.vmem %s22_s27, 4096  ;;  %p1432_p6 = scmp.lt.s32.totalorder %s22_s27, %s22_s27 }
  0x10   :  { %p1428_p5 = scmp.ne.s32.totalorder %s22_s27, %s1427_s10  ;;  %p1433_p7 = scmp.lt.s32.totalorder %s1427_s10, %s1427_s10 }
  0x12   :  { %p1434_p8 = por %p1433_p7, %p1432_p6 }
  0x14   :  { %p1435_p9 = pnand %p1434_p8, %p1428_p5 }
  0x16   :  { %1438 = shalt.err (!%p1435_p9)
}
  0x17   :  { %27 = dma.hbm_to_vmem [thread:$0]  %s1704_s0, 4096, %s22_s27, [#allocation3], %s1509_s29, %s1509_s29, %s1510_s30  }
  0x18   :  { %s1511_s13 = smov [#allocation7]   ;;  %s1512_s15 = smov [#allocation8]  }
  0x19   :  { %s47_s14 = sshll.u32 %s1511_s13, 4  ;;  %s61_s16 = sshll.u32 %s1512_s15, 4  ;;  %s48_s14 = int_to_ptr.vmem [resolvable:$true] %s47_s14  ;;  %s62_s16 = int_to_ptr.vmem [resolvable:$true] %s61_s16 }
  0x1a   :  { %s1447_s1 = scalar_lea.vmem %s48_s14, 2048  ;;  %p1452_p11 = scmp.lt.s32.totalorder %s48_s14, %s48_s14 }
  0x1b   :  { %p1448_p10 = scmp.ne.s32.totalorder %s48_s14, %s1447_s1  ;;  %p1453_p12 = scmp.lt.s32.totalorder %s1447_s1, %s1447_s1 }
  0x1d   :  { %p1454_p13 = por %p1453_p12, %p1452_p11 }
  0x1f   :  { %p1455_p0 = pnand %p1454_p13, %p1448_p10 }
  0x21   :  { %1458 = shalt.err (!%p1455_p0)
}
  0x22   :  { %53 = dma.hbm_to_vmem [thread:$0]  %s1707_s3, 2048, %s48_s14, [#allocation6], %s1509_s29, %s1509_s29, %s1510_s30  }
  0x23   :  { %s1467_s0 = scalar_lea.vmem %s62_s16, 2048  ;;  %p1472_p2 = scmp.lt.s32.totalorder %s62_s16, %s62_s16 }
  0x24   :  { %p1468_p1 = scmp.ne.s32.totalorder %s62_s16, %s1467_s0  ;;  %p1473_p3 = scmp.lt.s32.totalorder %s1467_s0, %s1467_s0 }
  0x26   :  { %p1474_p4 = por %p1473_p3, %p1472_p2 }
  0x28   :  { %p1475_p5 = pnand %p1474_p4, %p1468_p1 }
  0x2a   :  { %1478 = shalt.err (!%p1475_p5)
}
  0x2b   :  { %67 = dma.hbm_to_vmem [thread:$0]  %s1709_s5, 2048, %s62_s16, [#allocation9], %s1509_s29, %s1509_s29, %s1510_s30  }
  0x2c   :  { %1499 = dma.done.wait [#allocation3], 4096  }
  0x2d   :  { %1500 = vsyncadd [#allocation3], 4294963200 }
  0x2e   :  { %1501 = dma.done.wait [#allocation6], 4096  }
  0x2f   :  { %1502 = vsyncadd [#allocation6], 4294963200 }
  0x30   :  { %1503 = dma.done.wait [#allocation9], 2048  }
  0x31   :  { %1504 = vsyncadd [#allocation9], 4294965248  ;;  %v129_v0 = vld [vmem:[#allocation5 + $0x78] sm:$0xff]  ;;  %v128_v1 = vld [vmem:[#allocation5 + $0x70] sm:$0xff] }
  0x32   :  { %1120 = vmatprep.subr.mxu0 %v129_v0  ;;  %1360 = vmatprep.subr.mxu1 %v129_v0  ;;  %v127_v2 = vld [vmem:[#allocation5 + $0x68] sm:$0xff]  ;;  %v126_v3 = vld [vmem:[#allocation5 + $0x60] sm:$0xff]  ;;  %v125_v5 = vld [vmem:[#allocation5 + $0x58] sm:$0xff] }
  0x33   :  { %1121 = vmatpush3.msra.mxu0 %v129_v0  ;;  %1376 = vmatpush3.msra.mxu1 %v129_v0  ;;  %v82_v4 = vld [vmem:[#allocation2] sm:$0xff]  ;;  %v124_v6 = vld [vmem:[#allocation5 + $0x50] sm:$0xff]  ;;  %v123_v7 = vld [vmem:[#allocation5 + $0x48] sm:$0xff] }
  0x34   :  { %1122 = vmatprep.subr.mxu0 %v128_v1  ;;  %1361 = vmatprep.subr.mxu1 %v128_v1  ;;  %v122_v8 = vld [vmem:[#allocation5 + $0x40] sm:$0xff]  ;;  %v121_v9 = vld [vmem:[#allocation5 + $0x38] sm:$0xff]  ;;  %v120_v10 = vld [vmem:[#allocation5 + $0x30] sm:$0xff] }
  0x35   :  { %1123 = vmatpush3.msra.mxu0 %v128_v1  ;;  %1377 = vmatpush3.msra.mxu1 %v128_v1  ;;  %v119_v11 = vld [vmem:[#allocation5 + $0x28] sm:$0xff]  ;;  %v118_v12 = vld [vmem:[#allocation5 + $0x20] sm:$0xff]  ;;  %v117_v13 = vld [vmem:[#allocation5 + $0x18] sm:$0xff] }
  0x36   :  { %1124 = vmatprep.subr.mxu0 %v127_v2  ;;  %1362 = vmatprep.subr.mxu1 %v127_v2  ;;  %v116_v14 = vld [vmem:[#allocation5 + $0x10] sm:$0xff]  ;;  %v115_v15 = vld [vmem:[#allocation5 + $0x8] sm:$0xff]  ;;  %v114_v16 = vld [vmem:[#allocation5] sm:$0xff] }
  0x37   :  { %1125 = vmatpush3.msra.mxu0 %v127_v2  ;;  %1152 = vmatprep.mubr.f32.mxu0 %v82_v4  ;;  %v83_v17 = vld [vmem:[#allocation2 + $0x8] sm:$0xff]  ;;  %v84_v18 = vld [vmem:[#allocation2 + $0x10] sm:$0xff]  ;;  %v98_v19 = vld [vmem:[#allocation2 + $0x80] sm:$0xff] }
  0x38   :  { %1126 = vmatprep.subr.mxu0 %v126_v3  ;;  %1378 = vmatpush3.msra.mxu1 %v127_v2  ;;  %v99_v20 = vld [vmem:[#allocation2 + $0x88] sm:$0xff]  ;;  %v409_v21 = vld [vmem:[#allocation7 + $0x78] sm:$0xff]  ;;  %v100_v22 = vld [vmem:[#allocation2 + $0x90] sm:$0xff] }
  0x39   :  { %1127 = vmatpush3.msra.mxu0 %v126_v3  ;;  %1363 = vmatprep.subr.mxu1 %v126_v3  ;;  %v85_v23 = vld [vmem:[#allocation2 + $0x18] sm:$0xff]  ;;  %v408_v24 = vld [vmem:[#allocation7 + $0x70] sm:$0xff]  ;;  %v86_v25 = vld [vmem:[#allocation2 + $0x20] sm:$0xff] }
  0x3a   :  { %1128 = vmatprep.subr.mxu0 %v125_v5  ;;  %1379 = vmatpush3.msra.mxu1 %v126_v3  ;;  %v101_v26 = vld [vmem:[#allocation2 + $0x98] sm:$0xff]  ;;  %v407_v27 = vld [vmem:[#allocation7 + $0x68] sm:$0xff]  ;;  %v102_v28 = vld [vmem:[#allocation2 + $0xa0] sm:$0xff] }
  0x3b   :  { %1129 = vmatpush3.msra.mxu0 %v125_v5  ;;  %1364 = vmatprep.subr.mxu1 %v125_v5  ;;  %v87_v29 = vld [vmem:[#allocation2 + $0x28] sm:$0xff]  ;;  %v406_v30 = vld [vmem:[#allocation7 + $0x60] sm:$0xff]  ;;  %v88_v31 = vld [vmem:[#allocation2 + $0x30] sm:$0xff] }
  0x3c   :  { %1130 = vmatprep.subr.mxu0 %v124_v6  ;;  %1380 = vmatpush3.msra.mxu1 %v125_v5  ;;  %v103_v32 = vld [vmem:[#allocation2 + $0xa8] sm:$0xff]  ;;  %v405_v33 = vld [vmem:[#allocation7 + $0x58] sm:$0xff]  ;;  %v104_v34 = vld [vmem:[#allocation2 + $0xb0] sm:$0xff] }
  0x3d   :  { %1131 = vmatpush3.msra.mxu0 %v124_v6  ;;  %1365 = vmatprep.subr.mxu1 %v124_v6  ;;  %v89_v35 = vld [vmem:[#allocation2 + $0x38] sm:$0xff]  ;;  %v404_v36 = vld [vmem:[#allocation7 + $0x50] sm:$0xff]  ;;  %v90_v37 = vld [vmem:[#allocation2 + $0x40] sm:$0xff] }
  0x3e   :  { %1132 = vmatprep.subr.mxu0 %v123_v7  ;;  %1381 = vmatpush3.msra.mxu1 %v124_v6  ;;  %v105_v38 = vld [vmem:[#allocation2 + $0xb8] sm:$0xff]  ;;  %v403_v39 = vld [vmem:[#allocation7 + $0x48] sm:$0xff]  ;;  %v106_v40 = vld [vmem:[#allocation2 + $0xc0] sm:$0xff] }
  0x3f   :  { %1133 = vmatpush3.msra.mxu0 %v123_v7  ;;  %1366 = vmatprep.subr.mxu1 %v123_v7  ;;  %v91_v41 = vld [vmem:[#allocation2 + $0x48] sm:$0xff]  ;;  %v402_v42 = vld [vmem:[#allocation7 + $0x40] sm:$0xff]  ;;  %v92_v43 = vld [vmem:[#allocation2 + $0x50] sm:$0xff] }
  0x40   :  { %1134 = vmatprep.subr.mxu0 %v122_v8  ;;  %1382 = vmatpush3.msra.mxu1 %v123_v7  ;;  %v107_v44 = vld [vmem:[#allocation2 + $0xc8] sm:$0xff]  ;;  %v401_v45 = vld [vmem:[#allocation7 + $0x38] sm:$0xff]  ;;  %v108_v46 = vld [vmem:[#allocation2 + $0xd0] sm:$0xff] }
  0x41   :  { %1135 = vmatpush3.msra.mxu0 %v122_v8  ;;  %1367 = vmatprep.subr.mxu1 %v122_v8  ;;  %v93_v47 = vld [vmem:[#allocation2 + $0x58] sm:$0xff]  ;;  %v400_v48 = vld [vmem:[#allocation7 + $0x30] sm:$0xff]  ;;  %v94_v49 = vld [vmem:[#allocation2 + $0x60] sm:$0xff] }
  0x42   :  { %1136 = vmatprep.subr.mxu0 %v121_v9  ;;  %1383 = vmatpush3.msra.mxu1 %v122_v8  ;;  %v109_v50 = vld [vmem:[#allocation2 + $0xd8] sm:$0xff]  ;;  %v399_v51 = vld [vmem:[#allocation7 + $0x28] sm:$0xff]  ;;  %v110_v52 = vld [vmem:[#allocation2 + $0xe0] sm:$0xff] }
  0x43   :  { %1137 = vmatpush3.msra.mxu0 %v121_v9  ;;  %1368 = vmatprep.subr.mxu1 %v121_v9  ;;  %v95_v53 = vld [vmem:[#allocation2 + $0x68] sm:$0xff]  ;;  %v398_v54 = vld [vmem:[#allocation7 + $0x20] sm:$0xff]  ;;  %v96_v55 = vld [vmem:[#allocation2 + $0x70] sm:$0xff] }
  0x44   :  { %1138 = vmatprep.subr.mxu0 %v120_v10  ;;  %1384 = vmatpush3.msra.mxu1 %v121_v9  ;;  %v111_v56 = vld [vmem:[#allocation2 + $0xe8] sm:$0xff]  ;;  %v397_v57 = vld [vmem:[#allocation7 + $0x18] sm:$0xff]  ;;  %v112_v58 = vld [vmem:[#allocation2 + $0xf0] sm:$0xff] }
  0x45   :  { %1139 = vmatpush3.msra.mxu0 %v120_v10  ;;  %1369 = vmatprep.subr.mxu1 %v120_v10  ;;  %v97_v59 = vld [vmem:[#allocation2 + $0x78] sm:$0xff]  ;;  %v396_v61 = vld [vmem:[#allocation7 + $0x10] sm:$0xff]  ;;  %v395_v62 = vld [vmem:[#allocation7 + $0x8] sm:$0xff] }
  0x46   :  { %1140 = vmatprep.subr.mxu0 %v119_v11  ;;  %1385 = vmatpush3.msra.mxu1 %v120_v10  ;;  %v113_v60 = vld [vmem:[#allocation2 + $0xf8] sm:$0xff]  ;;  %v394_v63 = vld [vmem:[#allocation7] sm:$0xff]  ;;  %v688_v1 = vld [vmem:[#allocation8 + $0x70] sm:$0xff] }
  0x47   :  { %1141 = vmatpush3.msra.mxu0 %v119_v11  ;;  %1370 = vmatprep.subr.mxu1 %v119_v11  ;;  %v689_v0 = vld [vmem:[#allocation8 + $0x78] sm:$0xff]  ;;  %v687_v2 = vld [vmem:[#allocation8 + $0x68] sm:$0xff]  ;;  %v686_v3 = vld [vmem:[#allocation8 + $0x60] sm:$0xff] }
  0x48   :  { %1142 = vmatprep.subr.mxu0 %v118_v12  ;;  %1386 = vmatpush3.msra.mxu1 %v119_v11  ;;  %v685_v4 = vld [vmem:[#allocation8 + $0x58] sm:$0xff]  ;;  %v684_v5 = vld [vmem:[#allocation8 + $0x50] sm:$0xff]  ;;  %v683_v6 = vld [vmem:[#allocation8 + $0x48] sm:$0xff] }
  0x49   :  { %1143 = vmatpush3.msra.mxu0 %v118_v12  ;;  %1371 = vmatprep.subr.mxu1 %v118_v12  ;;  %v682_v7 = vld [vmem:[#allocation8 + $0x40] sm:$0xff]  ;;  %v681_v8 = vld [vmem:[#allocation8 + $0x38] sm:$0xff]  ;;  %v680_v9 = vld [vmem:[#allocation8 + $0x30] sm:$0xff] }
  0x4a   :  { %1144 = vmatprep.subr.mxu0 %v117_v13  ;;  %1387 = vmatpush3.msra.mxu1 %v118_v12  ;;  %v679_v10 = vld [vmem:[#allocation8 + $0x28] sm:$0xff]  ;;  %v678_v11 = vld [vmem:[#allocation8 + $0x20] sm:$0xff]  ;;  %v677_v12 = vld [vmem:[#allocation8 + $0x18] sm:$0xff] }
  0x4b   :  { %1145 = vmatpush3.msra.mxu0 %v117_v13  ;;  %1372 = vmatprep.subr.mxu1 %v117_v13 }
  0x4c   :  { %1146 = vmatprep.subr.mxu0 %v116_v14  ;;  %1388 = vmatpush3.msra.mxu1 %v117_v13  ;;  %v1581_v13 = vld [vmem:[%s1706_s2] ss:$0 sm:$0xff] }
  0x4d   :  { %1147 = vmatpush3.msra.mxu0 %v116_v14  ;;  %1373 = vmatprep.subr.mxu1 %v116_v14 }
  0x4e   :  { %1148 = vmatprep.subr.mxu0 %v115_v15  ;;  %1389 = vmatpush3.msra.mxu1 %v116_v14 }
  0x4f   :  { %1149 = vmatpush3.msra.mxu0 %v115_v15  ;;  %1374 = vmatprep.subr.mxu1 %v115_v15 }
  0x50   :  { %1150 = vmatprep.subr.mxu0 %v114_v16  ;;  %1390 = vmatpush3.msra.mxu1 %v115_v15 }
  0x51   :  { %1151 = vmatpush3.msra.mxu0 %v114_v16  ;;  %1375 = vmatprep.subr.mxu1 %v114_v16 }
  0x52   :  { %1153 = vmatmul.mubr.f32.vlgmr.msra.gmra.mxu0 %v83_v17  ;;  %1391 = vmatpush3.msra.mxu1 %v114_v16 }
  0x53   :  { %1155 = vmatprep.mubr.f32.mxu0 %v84_v18  ;;  %1176 = vmatprep.mubr.f32.mxu1 %v98_v19 }
  0x54   :  { %1177 = vmatmul.mubr.f32.vlgmr.msra.gmra.mxu1 %v99_v20  ;;  %1200 = vmatprep.subr.mxu1 %v409_v21 }
  0x55   :  { %1179 = vmatprep.mubr.f32.mxu1 %v100_v22  ;;  %1201 = vmatpush3.msra.mxu1 %v409_v21 }
  0x56   :  { %1156 = vmatmul.mubr.f32.gmra.mxu0 %v85_v23  ;;  %1202 = vmatprep.subr.mxu1 %v408_v24 }
  0x57   :  { %1158 = vmatprep.mubr.f32.mxu0 %v86_v25  ;;  %1203 = vmatpush3.msra.mxu1 %v408_v24 }
  0x58   :  { %1180 = vmatmul.mubr.f32.gmra.mxu1 %v101_v26  ;;  %1204 = vmatprep.subr.mxu1 %v407_v27 }
  0x59   :  { %1182 = vmatprep.mubr.f32.mxu1 %v102_v28  ;;  %1205 = vmatpush3.msra.mxu1 %v407_v27 }
  0x5a   :  { %1159 = vmatmul.mubr.f32.gmra.mxu0 %v87_v29  ;;  %1206 = vmatprep.subr.mxu1 %v406_v30 }
  0x5b   :  { %1161 = vmatprep.mubr.f32.mxu0 %v88_v31  ;;  %1207 = vmatpush3.msra.mxu1 %v406_v30 }
  0x5c   :  { %1183 = vmatmul.mubr.f32.gmra.mxu1 %v103_v32  ;;  %1208 = vmatprep.subr.mxu1 %v405_v33 }
  0x5d   :  { %1185 = vmatprep.mubr.f32.mxu1 %v104_v34  ;;  %1209 = vmatpush3.msra.mxu1 %v405_v33 }
  0x5e   :  { %1162 = vmatmul.mubr.f32.gmra.mxu0 %v89_v35  ;;  %1210 = vmatprep.subr.mxu1 %v404_v36 }
  0x5f   :  { %1164 = vmatprep.mubr.f32.mxu0 %v90_v37  ;;  %1211 = vmatpush3.msra.mxu1 %v404_v36 }
  0x60   :  { %1186 = vmatmul.mubr.f32.gmra.mxu1 %v105_v38  ;;  %1212 = vmatprep.subr.mxu1 %v403_v39 }
  0x61   :  { %1188 = vmatprep.mubr.f32.mxu1 %v106_v40  ;;  %1213 = vmatpush3.msra.mxu1 %v403_v39 }
  0x62   :  { %1165 = vmatmul.mubr.f32.gmra.mxu0 %v91_v41  ;;  %1214 = vmatprep.subr.mxu1 %v402_v42 }
  0x63   :  { %1167 = vmatprep.mubr.f32.mxu0 %v92_v43  ;;  %1215 = vmatpush3.msra.mxu1 %v402_v42 }
  0x64   :  { %1189 = vmatmul.mubr.f32.gmra.mxu1 %v107_v44  ;;  %1216 = vmatprep.subr.mxu1 %v401_v45 }
  0x65   :  { %1191 = vmatprep.mubr.f32.mxu1 %v108_v46  ;;  %1217 = vmatpush3.msra.mxu1 %v401_v45 }
  0x66   :  { %1168 = vmatmul.mubr.f32.gmra.mxu0 %v93_v47  ;;  %1218 = vmatprep.subr.mxu1 %v400_v48 }
  0x67   :  { %1170 = vmatprep.mubr.f32.mxu0 %v94_v49  ;;  %1219 = vmatpush3.msra.mxu1 %v400_v48 }
  0x68   :  { %1192 = vmatmul.mubr.f32.gmra.mxu1 %v109_v50  ;;  %1220 = vmatprep.subr.mxu1 %v399_v51 }
  0x69   :  { %1194 = vmatprep.mubr.f32.mxu1 %v110_v52  ;;  %1221 = vmatpush3.msra.mxu1 %v399_v51 }
  0x6a   :  { %1171 = vmatmul.mubr.f32.gmra.mxu0 %v95_v53  ;;  %1222 = vmatprep.subr.mxu1 %v398_v54 }
  0x6b   :  { %1173 = vmatprep.mubr.f32.mxu0 %v96_v55  ;;  %1223 = vmatpush3.msra.mxu1 %v398_v54 }
  0x6c   :  { %1195 = vmatmul.mubr.f32.gmra.mxu1 %v111_v56  ;;  %1224 = vmatprep.subr.mxu1 %v397_v57 }
  0x6d   :  { %1197 = vmatprep.mubr.f32.mxu1 %v112_v58  ;;  %1225 = vmatpush3.msra.mxu1 %v397_v57 }
  0x6e   :  { %1174 = vmatmul.mubr.f32.gmra.mxu0 %v97_v59  ;;  %1226 = vmatprep.subr.mxu1 %v396_v61 }
  0x6f   :  { %1227 = vmatpush3.msra.mxu1 %v396_v61  ;;  %1280 = vmatprep.subr.mxu0 %v689_v0 }
  0x70   :  { %1198 = vmatmul.mubr.f32.gmra.mxu1 %v113_v60  ;;  %1228 = vmatprep.subr.mxu1 %v395_v62 }
  0x71   :  { %1229 = vmatpush3.msra.mxu1 %v395_v62  ;;  %1281 = vmatpush3.msra.mxu0 %v689_v0 }
  0x72   :  { %1230 = vmatprep.subr.mxu1 %v394_v63  ;;  %1282 = vmatprep.subr.mxu0 %v688_v1 }
  0x73   :  { %1231 = vmatpush3.msra.mxu1 %v394_v63  ;;  %1283 = vmatpush3.msra.mxu0 %v688_v1 }
  0x74   :  { %1284 = vmatprep.subr.mxu0 %v687_v2 }
  0x75   :  { %1285 = vmatpush3.msra.mxu0 %v687_v2 }
  0x76   :  { %1286 = vmatprep.subr.mxu0 %v686_v3 }
  0x77   :  { %1287 = vmatpush3.msra.mxu0 %v686_v3 }
  0x78   :  { %1288 = vmatprep.subr.mxu0 %v685_v4 }
  0x79   :  { %1289 = vmatpush3.msra.mxu0 %v685_v4 }
  0x7a   :  { %1290 = vmatprep.subr.mxu0 %v684_v5 }
  0x7b   :  { %1291 = vmatpush3.msra.mxu0 %v684_v5 }
  0x7c   :  { %1292 = vmatprep.subr.mxu0 %v683_v6 }
  0x7d   :  { %1293 = vmatpush3.msra.mxu0 %v683_v6 }
  0x7e   :  { %1294 = vmatprep.subr.mxu0 %v682_v7 }
  0x7f   :  { %1295 = vmatpush3.msra.mxu0 %v682_v7 }
  0x80   :  { %1296 = vmatprep.subr.mxu0 %v681_v8 }
  0x81   :  { %1297 = vmatpush3.msra.mxu0 %v681_v8 }
  0x82   :  { %1298 = vmatprep.subr.mxu0 %v680_v9 }
  0x83   :  { %1299 = vmatpush3.msra.mxu0 %v680_v9 }
  0x84   :  { %1300 = vmatprep.subr.mxu0 %v679_v10 }
  0x85   :  { %1301 = vmatpush3.msra.mxu0 %v679_v10 }
  0x86   :  { %1302 = vmatprep.subr.mxu0 %v678_v11 }
  0x87   :  { %1303 = vmatpush3.msra.mxu0 %v678_v11 }
  0x88   :  { %1304 = vmatprep.subr.mxu0 %v677_v12 }
  0x89   :  { %1305 = vmatpush3.msra.mxu0 %v677_v12 }
 0x112   :  { %v1154_v14 = vpop.f32.mrf.mxu0 }
 0x113   :  { %v209_v15 = vadd.f32 %v1154_v14, %v1581_v13 }
 0x114   :  { %v203_v16 = vpop.f32.mrf.mxu0  ;;  %v1584_v17 = vpop.f32.mrf.mxu1 }
 0x115   :  { %v204_v18 = vadd.f32 %v1581_v13, %v203_v16  ;;  %v363_v22 = vmax.f32 %v209_v15, 0.0  ;;  %v289_v11 = vadd.f32 %v1584_v17, %v1581_v13 }
 0x116   :  { %v1157_v19 = vpop.f32.mrf.mxu0  ;;  %v283_v20 = vpop.f32.mrf.mxu1 }
 0x117   :  { %v362_v21 = vmax.f32 %v204_v18, 0.0  ;;  %v219_v23 = vadd.f32 %v1157_v19, %v1581_v13  ;;  %v284_v1 = vadd.f32 %v1581_v13, %v283_v20  ;;  %v379_v16 = vmax.f32 %v289_v11, 0.0 }
 0x118   :  { %v213_v24 = vpop.f32.mrf.mxu0  ;;  %v1588_v25 = vpop.f32.mrf.mxu1 }
 0x119   :  { %v214_v26 = vadd.f32 %v1581_v13, %v213_v24  ;;  %1232 = vmatprep.mubr.f32.mxu1 %v362_v21  ;;  %v365_v30 = vmax.f32 %v219_v23, 0.0  ;;  %v378_v8 = vmax.f32 %v284_v1, 0.0  ;;  %v299_v18 = vadd.f32 %v1588_v25, %v1581_v13 }
 0x11a   :  { %v1160_v27 = vpop.f32.mrf.mxu0  ;;  %1233 = vmatmul.mubr.f32.vlgmr.msra.gmra.mxu1 %v363_v22  ;;  %v293_v28 = vpop.f32.mrf.mxu1 }
 0x11b   :  { %v364_v29 = vmax.f32 %v214_v26, 0.0  ;;  %v229_v31 = vadd.f32 %v1160_v27, %v1581_v13  ;;  %v294_v9 = vadd.f32 %v1581_v13, %v293_v28  ;;  %v381_v22 = vmax.f32 %v299_v18, 0.0 }
 0x11c   :  { %v223_v32 = vpop.f32.mrf.mxu0  ;;  %v1592_v33 = vpop.f32.mrf.mxu1 }
 0x11d   :  { %v224_v34 = vadd.f32 %v1581_v13, %v223_v32  ;;  %1235 = vmatprep.mubr.f32.mxu1 %v364_v29  ;;  %v367_v37 = vmax.f32 %v229_v31, 0.0  ;;  %v380_v14 = vmax.f32 %v294_v9, 0.0  ;;  %v309_v17 = vadd.f32 %v1592_v33, %v1581_v13 }
 0x11e   :  { %v1163_v35 = vpop.f32.mrf.mxu0  ;;  %1236 = vmatmul.mubr.f32.gmra.mxu1 %v365_v30  ;;  %v303_v40 = vpop.f32.mrf.mxu1 }
 0x11f   :  { %v366_v36 = vmax.f32 %v224_v34, 0.0  ;;  %v239_v38 = vadd.f32 %v1163_v35, %v1581_v13  ;;  %v304_v15 = vadd.f32 %v1581_v13, %v303_v40  ;;  %v383_v27 = vmax.f32 %v309_v17, 0.0 }
 0x120   :  { %v233_v39 = vpop.f32.mrf.mxu0  ;;  %v1187_v47 = vpop.f32.mrf.mxu1 }
 0x121   :  { %v234_v41 = vadd.f32 %v1581_v13, %v233_v39  ;;  %1238 = vmatprep.mubr.f32.mxu1 %v366_v36  ;;  %v369_v44 = vmax.f32 %v239_v38, 0.0  ;;  %v382_v20 = vmax.f32 %v304_v15, 0.0  ;;  %v319_v28 = vadd.f32 %v1187_v47, %v1581_v13  ;;  %v676_v47 = vld [vmem:[#allocation8 + $0x10] sm:$0xff] }
 0x122   :  { %v1166_v42 = vpop.f32.mrf.mxu0  ;;  %1239 = vmatmul.mubr.f32.gmra.mxu1 %v367_v37  ;;  %v313_v54 = vpop.f32.mrf.mxu1  ;;  %1306 = vmatprep.subr.mxu0 %v676_v47 }
 0x123   :  { %v368_v43 = vmax.f32 %v234_v41, 0.0  ;;  %v249_v45 = vadd.f32 %v1166_v42, %v1581_v13  ;;  %v314_v21 = vadd.f32 %v1581_v13, %v313_v54  ;;  %v385_v31 = vmax.f32 %v319_v28, 0.0  ;;  %1307 = vmatpush3.msra.mxu0 %v676_v47 }
 0x124   :  { %v243_v46 = vpop.f32.mrf.mxu0  ;;  %v1190_v61 = vpop.f32.mrf.mxu1 }
 0x125   :  { %v244_v48 = vadd.f32 %v1581_v13, %v243_v46  ;;  %1241 = vmatprep.mubr.f32.mxu1 %v368_v43  ;;  %v371_v51 = vmax.f32 %v249_v45, 0.0  ;;  %v384_v24 = vmax.f32 %v314_v21, 0.0  ;;  %v329_v32 = vadd.f32 %v1190_v61, %v1581_v13 }
 0x126   :  { %v1169_v49 = vpop.f32.mrf.mxu0  ;;  %1242 = vmatmul.mubr.f32.gmra.mxu1 %v369_v44  ;;  %v323_v5 = vpop.f32.mrf.mxu1 }
 0x127   :  { %v370_v50 = vmax.f32 %v244_v48, 0.0  ;;  %v259_v52 = vadd.f32 %v1169_v49, %v1581_v13  ;;  %v324_v26 = vadd.f32 %v1581_v13, %v323_v5  ;;  %v387_v36 = vmax.f32 %v329_v32, 0.0  ;;  %v675_v48 = vld [vmem:[#allocation8 + $0x8] sm:$0xff]  ;;  %v674_v49 = vld [vmem:[#allocation8] sm:$0xff] }
 0x128   :  { %v253_v53 = vpop.f32.mrf.mxu0  ;;  %v1193_v12 = vpop.f32.mrf.mxu1  ;;  %1308 = vmatprep.subr.mxu0 %v675_v48 }
 0x129   :  { %v254_v55 = vadd.f32 %v1581_v13, %v253_v53  ;;  %1244 = vmatprep.mubr.f32.mxu1 %v370_v50  ;;  %v373_v58 = vmax.f32 %v259_v52, 0.0  ;;  %v386_v29 = vmax.f32 %v324_v26, 0.0  ;;  %v339_v37 = vadd.f32 %v1193_v12, %v1581_v13  ;;  %1309 = vmatpush3.msra.mxu0 %v675_v48  ;;  %v1627_v50 = vld [vmem:[%s1708_s4] ss:$0 sm:$0xff] }
 0x12a   :  { %v1172_v56 = vpop.f32.mrf.mxu0  ;;  %1245 = vmatmul.mubr.f32.gmra.mxu1 %v371_v51  ;;  %v333_v19 = vpop.f32.mrf.mxu1  ;;  %1310 = vmatprep.subr.mxu0 %v674_v49 }
 0x12b   :  { %v372_v57 = vmax.f32 %v254_v55, 0.0  ;;  %v269_v59 = vadd.f32 %v1172_v56, %v1581_v13  ;;  %v334_v30 = vadd.f32 %v1581_v13, %v333_v19  ;;  %v389_v41 = vmax.f32 %v339_v37, 0.0  ;;  %1311 = vmatpush3.msra.mxu0 %v674_v49 }
 0x12c   :  { %v263_v60 = vpop.f32.mrf.mxu0  ;;  %v1196_v23 = vpop.f32.mrf.mxu1 }
 0x12d   :  { %v264_v62 = vadd.f32 %v1581_v13, %v263_v60  ;;  %1247 = vmatprep.mubr.f32.mxu1 %v372_v57  ;;  %v375_v2 = vmax.f32 %v269_v59, 0.0  ;;  %v388_v33 = vmax.f32 %v334_v30, 0.0  ;;  %v349_v42 = vadd.f32 %v1196_v23, %v1581_v13 }
 0x12e   :  { %v1175_v63 = vpop.f32.mrf.mxu0  ;;  %1248 = vmatmul.mubr.f32.gmra.mxu1 %v373_v58  ;;  %v343_v25 = vpop.f32.mrf.mxu1 }
 0x12f   :  { %v374_v0 = vmax.f32 %v264_v62, 0.0  ;;  %v279_v3 = vadd.f32 %v1175_v63, %v1581_v13  ;;  %v344_v35 = vadd.f32 %v1581_v13, %v343_v25  ;;  %v391_v44 = vmax.f32 %v349_v42, 0.0 }
 0x130   :  { %v273_v4 = vpop.f32.mrf.mxu0  ;;  %v1199_v34 = vpop.f32.mrf.mxu1 }
 0x131   :  { %v274_v6 = vadd.f32 %v1581_v13, %v273_v4  ;;  %1250 = vmatprep.mubr.f32.mxu1 %v374_v0  ;;  %v377_v10 = vmax.f32 %v279_v3, 0.0  ;;  %v390_v39 = vmax.f32 %v344_v35, 0.0  ;;  %v359_v45 = vadd.f32 %v1199_v34, %v1581_v13 }
 0x132   :  { %1251 = vmatmul.mubr.f32.gmra.mxu1 %v375_v2  ;;  %v353_v38 = vpop.f32.mrf.mxu1 }
 0x133   :  { %v376_v7 = vmax.f32 %v274_v6, 0.0  ;;  %v354_v40 = vadd.f32 %v1581_v13, %v353_v38  ;;  %v393_v46 = vmax.f32 %v359_v45, 0.0 }
 0x135   :  { %1253 = vmatprep.mubr.f32.mxu1 %v376_v7  ;;  %v392_v43 = vmax.f32 %v354_v40, 0.0 }
 0x136   :  { %1254 = vmatmul.mubr.f32.gmra.mxu1 %v377_v10 }
 0x137   :  { %1256 = vmatprep.mubr.f32.mxu1 %v378_v8 }
 0x13a   :  { %1257 = vmatmul.mubr.f32.gmra.mxu1 %v379_v16 }
 0x13b   :  { %1259 = vmatprep.mubr.f32.mxu1 %v380_v14 }
 0x13e   :  { %1260 = vmatmul.mubr.f32.gmra.mxu1 %v381_v22 }
 0x13f   :  { %1262 = vmatprep.mubr.f32.mxu1 %v382_v20 }
 0x142   :  { %1263 = vmatmul.mubr.f32.gmra.mxu1 %v383_v27 }
 0x143   :  { %1265 = vmatprep.mubr.f32.mxu1 %v384_v24 }
 0x146   :  { %1266 = vmatmul.mubr.f32.gmra.mxu1 %v385_v31 }
 0x147   :  { %1268 = vmatprep.mubr.f32.mxu1 %v386_v29 }
 0x14a   :  { %1269 = vmatmul.mubr.f32.gmra.mxu1 %v387_v36 }
 0x14b   :  { %1271 = vmatprep.mubr.f32.mxu1 %v388_v33 }
 0x14e   :  { %1272 = vmatmul.mubr.f32.gmra.mxu1 %v389_v41 }
 0x14f   :  { %1274 = vmatprep.mubr.f32.mxu1 %v390_v39 }
 0x152   :  { %1275 = vmatmul.mubr.f32.gmra.mxu1 %v391_v44 }
 0x153   :  { %1277 = vmatprep.mubr.f32.mxu1 %v392_v43 }
 0x156   :  { %1278 = vmatmul.mubr.f32.gmra.mxu1 %v393_v46 }
 0x1da   :  { %v1234_v51 = vpop.f32.mrf.mxu1 }
 0x1db   :  { %v489_v13 = vadd.f32 %v1234_v51, %v1627_v50 }
 0x1dc   :  { %v483_v52 = vpop.f32.mrf.mxu1 }
 0x1dd   :  { %v484_v53 = vadd.f32 %v1627_v50, %v483_v52  ;;  %v643_v56 = vmax.f32 %v489_v13, 0.0 }
 0x1de   :  { %v1237_v54 = vpop.f32.mrf.mxu1 }
 0x1df   :  { %v642_v55 = vmax.f32 %v484_v53, 0.0  ;;  %v499_v57 = vadd.f32 %v1237_v54, %v1627_v50 }
 0x1e0   :  { %v493_v58 = vpop.f32.mrf.mxu1 }
 0x1e1   :  { %v494_v59 = vadd.f32 %v1627_v50, %v493_v58  ;;  %1312 = vmatprep.mubr.f32.mxu0 %v642_v55  ;;  %v645_v62 = vmax.f32 %v499_v57, 0.0 }
 0x1e2   :  { %v1240_v60 = vpop.f32.mrf.mxu1  ;;  %1313 = vmatmul.mubr.f32.vlgmr.msra.gmra.mxu0 %v643_v56 }
 0x1e3   :  { %v644_v61 = vmax.f32 %v494_v59, 0.0  ;;  %v509_v63 = vadd.f32 %v1240_v60, %v1627_v50 }
 0x1e4   :  { %v503_v0 = vpop.f32.mrf.mxu1 }
 0x1e5   :  { %v504_v1 = vadd.f32 %v1627_v50, %v503_v0  ;;  %1315 = vmatprep.mubr.f32.mxu0 %v644_v61  ;;  %v647_v4 = vmax.f32 %v509_v63, 0.0 }
 0x1e6   :  { %v1243_v2 = vpop.f32.mrf.mxu1  ;;  %1316 = vmatmul.mubr.f32.gmra.mxu0 %v645_v62 }
 0x1e7   :  { %v646_v3 = vmax.f32 %v504_v1, 0.0  ;;  %v519_v5 = vadd.f32 %v1243_v2, %v1627_v50 }
 0x1e8   :  { %v513_v6 = vpop.f32.mrf.mxu1 }
 0x1e9   :  { %v514_v7 = vadd.f32 %v1627_v50, %v513_v6  ;;  %1318 = vmatprep.mubr.f32.mxu0 %v646_v3  ;;  %v649_v10 = vmax.f32 %v519_v5, 0.0 }
 0x1ea   :  { %v1246_v8 = vpop.f32.mrf.mxu1  ;;  %1319 = vmatmul.mubr.f32.gmra.mxu0 %v647_v4 }
 0x1eb   :  { %v648_v9 = vmax.f32 %v514_v7, 0.0  ;;  %v529_v11 = vadd.f32 %v1246_v8, %v1627_v50 }
 0x1ec   :  { %v523_v12 = vpop.f32.mrf.mxu1 }
 0x1ed   :  { %v524_v14 = vadd.f32 %v1627_v50, %v523_v12  ;;  %1321 = vmatprep.mubr.f32.mxu0 %v648_v9  ;;  %v651_v18 = vmax.f32 %v529_v11, 0.0 }
 0x1ee   :  { %v1249_v15 = vpop.f32.mrf.mxu1  ;;  %1322 = vmatmul.mubr.f32.gmra.mxu0 %v649_v10 }
 0x1ef   :  { %v650_v16 = vmax.f32 %v524_v14, 0.0  ;;  %v539_v19 = vadd.f32 %v1249_v15, %v1627_v50 }
 0x1f0   :  { %v533_v20 = vpop.f32.mrf.mxu1 }
 0x1f1   :  { %v534_v21 = vadd.f32 %v1627_v50, %v533_v20  ;;  %1324 = vmatprep.mubr.f32.mxu0 %v650_v16  ;;  %v653_v23 = vmax.f32 %v539_v19, 0.0 }
 0x1f2   :  { %v1252_v22 = vpop.f32.mrf.mxu1  ;;  %1325 = vmatmul.mubr.f32.gmra.mxu0 %v651_v18 }
 0x1f3   :  { %v652_v17 = vmax.f32 %v534_v21, 0.0  ;;  %v549_v24 = vadd.f32 %v1252_v22, %v1627_v50  ;;  %v1664_v21 = vld [vmem:[%s1710_s6] ss:$0 sm:$0xff]  ;;  %s1513_s6 = smov [#allocation10]  }
 0x1f4   :  { %v543_v26 = vpop.f32.mrf.mxu1  ;;  %s959_s23 = sshll.u32 %s1513_s6, 4  ;;  %s960_s23 = int_to_ptr.vmem [resolvable:$true] %s959_s23 }
 0x1f5   :  { %v544_v27 = vadd.f32 %v1627_v50, %v543_v26  ;;  %1327 = vmatprep.mubr.f32.mxu0 %v652_v17  ;;  %v655_v29 = vmax.f32 %v549_v24, 0.0  ;;  %s1479_s24 = scalar_lea.vmem %s960_s23, 4096  ;;  %p1484_p7 = scmp.lt.s32.totalorder %s960_s23, %s960_s23 }
 0x1f6   :  { %v1255_v28 = vpop.f32.mrf.mxu1  ;;  %1328 = vmatmul.mubr.f32.gmra.mxu0 %v653_v23  ;;  %p1480_p6 = scmp.ne.s32.totalorder %s960_s23, %s1479_s24  ;;  %p1485_p8 = scmp.lt.s32.totalorder %s1479_s24, %s1479_s24 }
 0x1f7   :  { %v654_v25 = vmax.f32 %v544_v27, 0.0  ;;  %v559_v30 = vadd.f32 %v1255_v28, %v1627_v50 }
 0x1f8   :  { %v553_v31 = vpop.f32.mrf.mxu1  ;;  %p1486_p9 = por %p1485_p8, %p1484_p7 }
 0x1f9   :  { %v554_v32 = vadd.f32 %v1627_v50, %v553_v31  ;;  %1330 = vmatprep.mubr.f32.mxu0 %v654_v25  ;;  %v657_v35 = vmax.f32 %v559_v30, 0.0 }
 0x1fa   :  { %v1258_v34 = vpop.f32.mrf.mxu1  ;;  %1331 = vmatmul.mubr.f32.gmra.mxu0 %v655_v29  ;;  %p1487_p10 = pnand %p1486_p9, %p1480_p6 }
 0x1fb   :  { %v656_v33 = vmax.f32 %v554_v32, 0.0  ;;  %v569_v36 = vadd.f32 %v1258_v34, %v1627_v50 }
 0x1fc   :  { %v563_v37 = vpop.f32.mrf.mxu1 }
 0x1fd   :  { %v564_v38 = vadd.f32 %v1627_v50, %v563_v37  ;;  %1333 = vmatprep.mubr.f32.mxu0 %v656_v33  ;;  %v659_v41 = vmax.f32 %v569_v36, 0.0 }
 0x1fe   :  { %v1261_v39 = vpop.f32.mrf.mxu1  ;;  %1334 = vmatmul.mubr.f32.gmra.mxu0 %v657_v35 }
 0x1ff   :  { %v658_v40 = vmax.f32 %v564_v38, 0.0  ;;  %v579_v42 = vadd.f32 %v1261_v39, %v1627_v50 }
 0x200   :  { %v573_v43 = vpop.f32.mrf.mxu1 }
 0x201   :  { %v574_v44 = vadd.f32 %v1627_v50, %v573_v43  ;;  %1336 = vmatprep.mubr.f32.mxu0 %v658_v40  ;;  %v661_v47 = vmax.f32 %v579_v42, 0.0 }
 0x202   :  { %v1264_v45 = vpop.f32.mrf.mxu1  ;;  %1337 = vmatmul.mubr.f32.gmra.mxu0 %v659_v41 }
 0x203   :  { %v660_v46 = vmax.f32 %v574_v44, 0.0  ;;  %v589_v48 = vadd.f32 %v1264_v45, %v1627_v50 }
 0x204   :  { %v583_v49 = vpop.f32.mrf.mxu1 }
 0x205   :  { %v584_v51 = vadd.f32 %v1627_v50, %v583_v49  ;;  %1339 = vmatprep.mubr.f32.mxu0 %v660_v46  ;;  %v663_v53 = vmax.f32 %v589_v48, 0.0 }
 0x206   :  { %v1267_v13 = vpop.f32.mrf.mxu1  ;;  %1340 = vmatmul.mubr.f32.gmra.mxu0 %v661_v47 }
 0x207   :  { %v662_v52 = vmax.f32 %v584_v51, 0.0  ;;  %v599_v54 = vadd.f32 %v1267_v13, %v1627_v50 }
 0x208   :  { %v593_v55 = vpop.f32.mrf.mxu1 }
 0x209   :  { %v594_v56 = vadd.f32 %v1627_v50, %v593_v55  ;;  %1342 = vmatprep.mubr.f32.mxu0 %v662_v52  ;;  %v665_v59 = vmax.f32 %v599_v54, 0.0 }
 0x20a   :  { %v1270_v57 = vpop.f32.mrf.mxu1  ;;  %1343 = vmatmul.mubr.f32.gmra.mxu0 %v663_v53 }
 0x20b   :  { %v664_v58 = vmax.f32 %v594_v56, 0.0  ;;  %v609_v60 = vadd.f32 %v1270_v57, %v1627_v50 }
 0x20c   :  { %v603_v61 = vpop.f32.mrf.mxu1 }
 0x20d   :  { %v604_v62 = vadd.f32 %v1627_v50, %v603_v61  ;;  %1345 = vmatprep.mubr.f32.mxu0 %v664_v58  ;;  %v667_v1 = vmax.f32 %v609_v60, 0.0 }
 0x20e   :  { %v1273_v63 = vpop.f32.mrf.mxu1  ;;  %1346 = vmatmul.mubr.f32.gmra.mxu0 %v665_v59 }
 0x20f   :  { %v666_v0 = vmax.f32 %v604_v62, 0.0  ;;  %v619_v2 = vadd.f32 %v1273_v63, %v1627_v50 }
 0x210   :  { %v613_v3 = vpop.f32.mrf.mxu1 }
 0x211   :  { %v614_v4 = vadd.f32 %v1627_v50, %v613_v3  ;;  %1348 = vmatprep.mubr.f32.mxu0 %v666_v0  ;;  %v669_v7 = vmax.f32 %v619_v2, 0.0 }
 0x212   :  { %v1276_v5 = vpop.f32.mrf.mxu1  ;;  %1349 = vmatmul.mubr.f32.gmra.mxu0 %v667_v1 }
 0x213   :  { %v668_v6 = vmax.f32 %v614_v4, 0.0  ;;  %v629_v8 = vadd.f32 %v1276_v5, %v1627_v50 }
 0x214   :  { %v623_v9 = vpop.f32.mrf.mxu1 }
 0x215   :  { %v624_v10 = vadd.f32 %v1627_v50, %v623_v9  ;;  %1351 = vmatprep.mubr.f32.mxu0 %v668_v6  ;;  %v671_v14 = vmax.f32 %v629_v8, 0.0 }
 0x216   :  { %v1279_v11 = vpop.f32.mrf.mxu1  ;;  %1352 = vmatmul.mubr.f32.gmra.mxu0 %v669_v7 }
 0x217   :  { %v670_v12 = vmax.f32 %v624_v10, 0.0  ;;  %v639_v15 = vadd.f32 %v1279_v11, %v1627_v50 }
 0x218   :  { %v633_v16 = vpop.f32.mrf.mxu1 }
 0x219   :  { %v634_v18 = vadd.f32 %v1627_v50, %v633_v16  ;;  %1354 = vmatprep.mubr.f32.mxu0 %v670_v12  ;;  %v673_v20 = vmax.f32 %v639_v15, 0.0 }
 0x21a   :  { %1355 = vmatmul.mubr.f32.gmra.mxu0 %v671_v14 }
 0x21b   :  { %v672_v19 = vmax.f32 %v634_v18, 0.0 }
 0x21d   :  { %1357 = vmatprep.mubr.f32.mxu0 %v672_v19 }
 0x21e   :  { %1358 = vmatmul.mubr.f32.gmra.mxu0 %v673_v20 }
 0x2a2   :  { %v1314_v22 = vpop.f32.mrf.mxu0 }
 0x2a3   :  { %v769_v17 = vadd.f32 %v1314_v22, %v1664_v21 }
 0x2a4   :  { %v763_v23 = vpop.f32.mrf.mxu0 }
 0x2a5   :  { %923 = vst [vmem:[#allocation10 + $0x8] sm:$0xff] %v769_v17  ;;  %v764_v24 = vadd.f32 %v1664_v21, %v763_v23 }
 0x2a6   :  { %v1317_v26 = vpop.f32.mrf.mxu0 }
 0x2a7   :  { %922 = vst [vmem:[#allocation10] sm:$0xff] %v764_v24  ;;  %v779_v50 = vadd.f32 %v1317_v26, %v1664_v21 }
 0x2a8   :  { %v773_v27 = vpop.f32.mrf.mxu0 }
 0x2a9   :  { %925 = vst [vmem:[#allocation10 + $0x18] sm:$0xff] %v779_v50  ;;  %v774_v28 = vadd.f32 %v1664_v21, %v773_v27 }
 0x2aa   :  { %v1320_v25 = vpop.f32.mrf.mxu0 }
 0x2ab   :  { %924 = vst [vmem:[#allocation10 + $0x10] sm:$0xff] %v774_v28  ;;  %v789_v29 = vadd.f32 %v1320_v25, %v1664_v21 }
 0x2ac   :  { %v783_v30 = vpop.f32.mrf.mxu0 }
 0x2ad   :  { %927 = vst [vmem:[#allocation10 + $0x28] sm:$0xff] %v789_v29  ;;  %v784_v31 = vadd.f32 %v1664_v21, %v783_v30 }
 0x2ae   :  { %v1323_v32 = vpop.f32.mrf.mxu0 }
 0x2af   :  { %926 = vst [vmem:[#allocation10 + $0x20] sm:$0xff] %v784_v31  ;;  %v799_v34 = vadd.f32 %v1323_v32, %v1664_v21 }
 0x2b0   :  { %v793_v33 = vpop.f32.mrf.mxu0 }
 0x2b1   :  { %929 = vst [vmem:[#allocation10 + $0x38] sm:$0xff] %v799_v34  ;;  %v794_v35 = vadd.f32 %v1664_v21, %v793_v33 }
 0x2b2   :  { %v1326_v36 = vpop.f32.mrf.mxu0 }
 0x2b3   :  { %928 = vst [vmem:[#allocation10 + $0x30] sm:$0xff] %v794_v35  ;;  %v809_v37 = vadd.f32 %v1326_v36, %v1664_v21 }
 0x2b4   :  { %v803_v38 = vpop.f32.mrf.mxu0 }
 0x2b5   :  { %931 = vst [vmem:[#allocation10 + $0x48] sm:$0xff] %v809_v37  ;;  %v804_v39 = vadd.f32 %v1664_v21, %v803_v38 }
 0x2b6   :  { %v1329_v40 = vpop.f32.mrf.mxu0 }
 0x2b7   :  { %930 = vst [vmem:[#allocation10 + $0x40] sm:$0xff] %v804_v39  ;;  %v819_v41 = vadd.f32 %v1329_v40, %v1664_v21 }
 0x2b8   :  { %v813_v42 = vpop.f32.mrf.mxu0 }
 0x2b9   :  { %933 = vst [vmem:[#allocation10 + $0x58] sm:$0xff] %v819_v41  ;;  %v814_v43 = vadd.f32 %v1664_v21, %v813_v42 }
 0x2ba   :  { %v1332_v44 = vpop.f32.mrf.mxu0 }
 0x2bb   :  { %932 = vst [vmem:[#allocation10 + $0x50] sm:$0xff] %v814_v43  ;;  %v829_v45 = vadd.f32 %v1332_v44, %v1664_v21 }
 0x2bc   :  { %v823_v46 = vpop.f32.mrf.mxu0 }
 0x2bd   :  { %935 = vst [vmem:[#allocation10 + $0x68] sm:$0xff] %v829_v45  ;;  %v824_v47 = vadd.f32 %v1664_v21, %v823_v46 }
 0x2be   :  { %v1335_v48 = vpop.f32.mrf.mxu0 }
 0x2bf   :  { %934 = vst [vmem:[#allocation10 + $0x60] sm:$0xff] %v824_v47  ;;  %v839_v49 = vadd.f32 %v1335_v48, %v1664_v21 }
 0x2c0   :  { %v833_v51 = vpop.f32.mrf.mxu0 }
 0x2c1   :  { %937 = vst [vmem:[#allocation10 + $0x78] sm:$0xff] %v839_v49  ;;  %v834_v13 = vadd.f32 %v1664_v21, %v833_v51 }
 0x2c2   :  { %v1338_v52 = vpop.f32.mrf.mxu0 }
 0x2c3   :  { %936 = vst [vmem:[#allocation10 + $0x70] sm:$0xff] %v834_v13  ;;  %v849_v53 = vadd.f32 %v1338_v52, %v1664_v21 }
 0x2c4   :  { %v843_v54 = vpop.f32.mrf.mxu0 }
 0x2c5   :  { %939 = vst [vmem:[#allocation10 + $0x88] sm:$0xff] %v849_v53  ;;  %v844_v55 = vadd.f32 %v1664_v21, %v843_v54 }
 0x2c6   :  { %v1341_v56 = vpop.f32.mrf.mxu0 }
 0x2c7   :  { %938 = vst [vmem:[#allocation10 + $0x80] sm:$0xff] %v844_v55  ;;  %v859_v57 = vadd.f32 %v1341_v56, %v1664_v21 }
 0x2c8   :  { %v853_v58 = vpop.f32.mrf.mxu0 }
 0x2c9   :  { %941 = vst [vmem:[#allocation10 + $0x98] sm:$0xff] %v859_v57  ;;  %v854_v59 = vadd.f32 %v1664_v21, %v853_v58 }
 0x2ca   :  { %v1344_v60 = vpop.f32.mrf.mxu0 }
 0x2cb   :  { %940 = vst [vmem:[#allocation10 + $0x90] sm:$0xff] %v854_v59  ;;  %v869_v61 = vadd.f32 %v1344_v60, %v1664_v21 }
 0x2cc   :  { %v863_v62 = vpop.f32.mrf.mxu0 }
 0x2cd   :  { %943 = vst [vmem:[#allocation10 + $0xa8] sm:$0xff] %v869_v61  ;;  %v864_v63 = vadd.f32 %v1664_v21, %v863_v62 }
 0x2ce   :  { %v1347_v0 = vpop.f32.mrf.mxu0 }
 0x2cf   :  { %942 = vst [vmem:[#allocation10 + $0xa0] sm:$0xff] %v864_v63  ;;  %v879_v1 = vadd.f32 %v1347_v0, %v1664_v21 }
 0x2d0   :  { %v873_v2 = vpop.f32.mrf.mxu0 }
 0x2d1   :  { %945 = vst [vmem:[#allocation10 + $0xb8] sm:$0xff] %v879_v1  ;;  %v874_v3 = vadd.f32 %v1664_v21, %v873_v2 }
 0x2d2   :  { %v1350_v4 = vpop.f32.mrf.mxu0 }
 0x2d3   :  { %944 = vst [vmem:[#allocation10 + $0xb0] sm:$0xff] %v874_v3  ;;  %v889_v5 = vadd.f32 %v1350_v4, %v1664_v21 }
 0x2d4   :  { %v883_v6 = vpop.f32.mrf.mxu0 }
 0x2d5   :  { %947 = vst [vmem:[#allocation10 + $0xc8] sm:$0xff] %v889_v5  ;;  %v884_v7 = vadd.f32 %v1664_v21, %v883_v6 }
 0x2d6   :  { %v1353_v8 = vpop.f32.mrf.mxu0 }
 0x2d7   :  { %946 = vst [vmem:[#allocation10 + $0xc0] sm:$0xff] %v884_v7  ;;  %v899_v9 = vadd.f32 %v1353_v8, %v1664_v21 }
 0x2d8   :  { %v893_v10 = vpop.f32.mrf.mxu0 }
 0x2d9   :  { %949 = vst [vmem:[#allocation10 + $0xd8] sm:$0xff] %v899_v9  ;;  %v894_v11 = vadd.f32 %v1664_v21, %v893_v10 }
 0x2da   :  { %v1356_v12 = vpop.f32.mrf.mxu0 }
 0x2db   :  { %948 = vst [vmem:[#allocation10 + $0xd0] sm:$0xff] %v894_v11  ;;  %v909_v14 = vadd.f32 %v1356_v12, %v1664_v21 }
 0x2dc   :  { %v903_v15 = vpop.f32.mrf.mxu0 }
 0x2dd   :  { %951 = vst [vmem:[#allocation10 + $0xe8] sm:$0xff] %v909_v14  ;;  %v904_v16 = vadd.f32 %v1664_v21, %v903_v15 }
 0x2de   :  { %v1359_v18 = vpop.f32.mrf.mxu0 }
 0x2df   :  { %950 = vst [vmem:[#allocation10 + $0xe0] sm:$0xff] %v904_v16  ;;  %v919_v19 = vadd.f32 %v1359_v18, %v1664_v21 }
 0x2e0   :  { %v913_v20 = vpop.f32.mrf.mxu0 }
 0x2e1   :  { %953 = vst [vmem:[#allocation10 + $0xf8] sm:$0xff] %v919_v19  ;;  %v914_v22 = vadd.f32 %v1664_v21, %v913_v20 }
 0x2e3   :  { %952 = vst [vmem:[#allocation10 + $0xf0] sm:$0xff] %v914_v22 }
 0x2e4   :  { %1490 = shalt.err (!%p1487_p10)
}
 0x2e5   :  { %965 = dma.vmem_to_hbm [thread:$0]  %s960_s23, 4096, %s1711_s7, [#allocation4], %s1509_s29, %s1509_s29, %s1510_s30  }
 0x2e6   :  { %1505 = dma.done.wait [#allocation4], 4096  }
 0x2e7   :  { %1506 = vsyncadd [#allocation4], 4294963200 }
 0x2e8   :  { %969 = vsyncpa [#allocation3], 1 }
 0x2e9   :  { %970 = vsyncpa [#allocation6], 1 }
 0x2ea   :  { %971 = vsyncpa [#allocation9], 1 }
 0x2eb   :  { %972 = vsyncpa [#allocation4], 1 }

</bundles_post_ra>
